<compile_context>
chip_gen: v7x
topology: tpu7x:2x2x1
jax: 0.10.0
libtpu: 0.0.40
codegen_flags: <defaults>
</compile_context>

<pallas_src>
import functools

import jax
import jax.numpy as jnp
from jax.experimental import pallas as pl
from jax.experimental.pallas import tpu as pltpu


_TARGET_BLOCK_BYTES = 4 * 1024 * 1024      # ~4 MiB row blocks (>= ~85% of HBM roofline)
_FUSED_MAX_BYTES = 4 * 1024 * 1024         # packed-f32 footprint limit for the fused path


def _round_up(a, b):
    return ((a + b - 1) // b) * b


@functools.lru_cache(maxsize=None)
def _vmem_budget_bytes():
    """Per-generation scoped-VMEM budget (v7x has 64 MiB/TC, v5e/v6e have 128 MiB)."""
    cap = 64 * 1024 * 1024
    try:
        info = pltpu.get_tpu_info()
        for name in ("vmem_capacity_bytes", "vmem_size_bytes", "vmem_bytes"):
            v = getattr(info, name, None)
            if v:
                cap = int(v)
                break
    except Exception:
        pass
    return max(32 * 1024 * 1024, min(cap // 2, 64 * 1024 * 1024))


def _pack_info(rows, h):
    """Lane-dense repack factor: fold rows into lanes when H < 128 divides 128."""
    if h < 128 and 128 % h == 0 and rows % (128 // h) == 0:
        rep = 128 // h
        return rep, 128
    # TODO(synk): for H that is not a clean divisor/multiple of 128, optionally zero-pad the
    # channel axis to the next multiple of 128 (full-width vst) at the cost of one pad copy.
    return 1, h


def _plan_tiling(packed_rows, lane_w, itemsize, target_bytes=_TARGET_BLOCK_BYTES):
    """Pick (tile_rows, cores, inner).  Tile is sized on the padded-to-128 lane footprint,
    rounded to the dtype's sublane packing (8/16/32), and shrunk so that at least two row
    blocks exist whenever possible (lets the leading 'parallel' axis use both TensorCores)."""
    sub = max(8, 32 // max(1, itemsize))              # 8 for f32, 16 for bf16, 32 for int8
    vmem_lane = _round_up(lane_w, 128)
    desired = (target_bytes // (vmem_lane * itemsize)) // sub * sub
    desired = max(desired, sub)
    if packed_rows >= 2 * sub:
        desired = min(desired, _round_up((packed_rows + 1) // 2, sub))
    tile = max(sub, min(desired, _round_up(packed_rows, sub)))
    nblocks = pl.cdiv(packed_rows, tile)
    cores = 2 if nblocks >= 2 else 1
    inner = pl.cdiv(nblocks, cores)
    return tile, cores, inner


# ----------------------------------------------------------------------------
# Kernel 1 (two-pass path): per-lane sum / sum-of-squares over the row axis.
# Grid = (cores, inner).  Accumulator block (1, 8, lane_w) is resident across the
# 'arbitrary' axis; 8-sublane partials are pure VPU adds, the final 8->1 fold and the
# cross-core sum happen in the (jit-fused) wrapper.  Ragged tail rows are masked in-kernel.
# ----------------------------------------------------------------------------
def _compute_stats(xp, tile, cores, inner, vmem_limit):
    packed_rows, lane_w = xp.shape
    nblocks = pl.cdiv(packed_rows, tile)
    need_mask = (tile * cores * inner) != packed_rows

    def kernel(x_ref, sum_ref, sq_ref):
        i = pl.program_id(1)

        @pl.when(i == 0)
        def _():
            sum_ref[...] = jnp.zeros_like(sum_ref)
            sq_ref[...] = jnp.zeros_like(sq_ref)

        xb = x_ref[...].astype(jnp.float32)
        if need_mask:
            c = pl.program_id(0)
            row0 = (c * inner + i) * tile
            rid = jax.lax.broadcasted_iota(jnp.int32, (tile, lane_w), 0)
            xb = jnp.where(row0 + rid < packed_rows, xb, 0.0)
        xr = xb.reshape(tile // 8, 8, lane_w)
        sum_ref[...] += jnp.sum(xr, axis=0)[None]
        sq_ref[...] += jnp.sum(xr * xr, axis=0)[None]

    # Clamp the block index so grid steps past the last real block never DMA out of bounds
    # (their contribution is zeroed by the in-kernel row mask).
    def x_index(c, i):
        return (jnp.minimum(c * inner + i, nblocks - 1), 0)

    out_shapes = (
        jax.ShapeDtypeStruct((cores, 8, lane_w), jnp.float32),
        jax.ShapeDtypeStruct((cores, 8, lane_w), jnp.float32),
    )
    return pl.pallas_call(
        kernel,
        out_shape=out_shapes,
        grid_spec=pltpu.PrefetchScalarGridSpec(
            num_scalar_prefetch=0,
            grid=(cores, inner),
            in_specs=[pl.BlockSpec((tile, lane_w), x_index)],
            out_specs=[
                pl.BlockSpec((1, 8, lane_w), lambda c, i: (c, 0, 0)),
                pl.BlockSpec((1, 8, lane_w), lambda c, i: (c, 0, 0)),
            ],
        ),
        compiler_params=pltpu.CompilerParams(
            dimension_semantics=("parallel", "arbitrary"),
            vmem_limit_bytes=vmem_limit,
        ),
    )(xp)


# ----------------------------------------------------------------------------
# Kernel 2 (two-pass path): elementwise  y = x * inv_std + shift   (shift = -mean*inv_std).
# Ragged last block: garbage tail rows are computed but never written back.
# ----------------------------------------------------------------------------
def _normalize(xp, scale_l, shift_l, tile, vmem_limit):
    packed_rows, lane_w = xp.shape
    nblocks = pl.cdiv(packed_rows, tile)

    def kernel(scale_ref, shift_ref, x_ref, o_ref):
        xb = x_ref[...].astype(jnp.float32)
        o_ref[...] = (xb * scale_ref[...] + shift_ref[...]).astype(o_ref.dtype)

    return pl.pallas_call(
        kernel,
        out_shape=jax.ShapeDtypeStruct((packed_rows, lane_w), xp.dtype),
        grid_spec=pltpu.PrefetchScalarGridSpec(
            num_scalar_prefetch=0,
            grid=(nblocks,),
            in_specs=[
                pl.BlockSpec((1, lane_w), lambda i: (0, 0)),      # inv_std
                pl.BlockSpec((1, lane_w), lambda i: (0, 0)),      # shift
                pl.BlockSpec((tile, lane_w), lambda i: (i, 0)),   # x
            ],
            out_specs=pl.BlockSpec((tile, lane_w), lambda i: (i, 0)),
        ),
        compiler_params=pltpu.CompilerParams(
            dimension_semantics=("parallel",),
            vmem_limit_bytes=vmem_limit,
        ),
    )(scale_l, shift_l, xp)
    # TODO(synk): wire input_output_aliases={2: 0} when the caller donates x, so y reuses
    # x's HBM buffer (left off by default: aliasing a non-donated input forces an extra copy).


# ----------------------------------------------------------------------------
# Fused kernel (small/mid x, accumulating): one pallas_call, x resident in VMEM.
# Computes per-lane batch sums, folds them per-channel with a 0/1 matmul (MXU), forms the
# updated mean / inv_std, and writes y = (x - mean) * inv_std.  Also outputs the per-lane
# batch sums so the wrapper can update the running buffers.
# ----------------------------------------------------------------------------
def _fused_forward(xp, inv_count, psum_l, psq_l, eps_l, fold_m, rep, vmem_limit):
    packed_rows, lane_w = xp.shape

    def kernel(*refs):
        if rep > 1:
            (inv_c_ref, psum_ref, psq_ref, eps_ref, fold_ref, x_ref,
             y_ref, xs_ref, xq_ref) = refs
        else:
            (inv_c_ref, psum_ref, psq_ref, eps_ref, x_ref,
             y_ref, xs_ref, xq_ref) = refs

        xb = x_ref[...].astype(jnp.float32)
        xs = jnp.sum(xb, axis=0, keepdims=True)          # (1, lane_w) per-lane batch sum
        xq = jnp.sum(xb * xb, axis=0, keepdims=True)     # (1, lane_w) per-lane batch sumsq
        xs_ref[...] = xs
        xq_ref[...] = xq

        if rep > 1:
            # Fold rep lane-groups onto per-channel totals (replicated back across groups)
            # with a tiny 0/1 matmul on the otherwise-idle MXU.
            xs_t = jnp.dot(xs, fold_ref[...], preferred_element_type=jnp.float32)
            xq_t = jnp.dot(xq, fold_ref[...], preferred_element_type=jnp.float32)
        else:
            xs_t, xq_t = xs, xq

        inv_c = inv_c_ref[0]                              # 1 / max(new_count, 1)
        mean = (psum_ref[...] + xs_t) * inv_c
        ex2 = (psq_ref[...] + xq_t) * inv_c
        var = jnp.maximum(ex2 - mean * mean, 0.0)         # clamp: cancellation -> no NaN
        std = jnp.maximum(jnp.sqrt(var), eps_ref[...])
        scale = 1.0 / std
        shift = -mean * scale
        y_ref[...] = (xb * scale + shift).astype(y_ref.dtype)

    smem = pl.BlockSpec(memory_space=pltpu.MemorySpace.SMEM)
    vmem = pl.BlockSpec(memory_space=pltpu.MemorySpace.VMEM)

    args = [inv_count, psum_l, psq_l, eps_l]
    in_specs = [smem, vmem, vmem, vmem]
    if rep > 1:
        args.append(fold_m)
        in_specs.append(vmem)
    args.append(xp)
    in_specs.append(vmem)

    out_shape = (
        jax.ShapeDtypeStruct((packed_rows, lane_w), xp.dtype),   # y
        jax.ShapeDtypeStruct((1, lane_w), jnp.float32),          # per-lane batch sum
        jax.ShapeDtypeStruct((1, lane_w), jnp.float32),          # per-lane batch sumsq
    )
    return pl.pallas_call(
        kernel,
        out_shape=out_shape,
        in_specs=in_specs,
        out_specs=(vmem, vmem, vmem),
        compiler_params=pltpu.CompilerParams(vmem_limit_bytes=vmem_limit),
    )(*args)


# ----------------------------------------------------------------------------
# Jitted forward (whole path, Pallas calls inside).  Two variants traced per
# (shape, accumulate) combination; all reshape / tile / partial-sum glue fuses.
# ----------------------------------------------------------------------------
def _to_lane(v, rep, lane_w):
    v = v.astype(jnp.float32).reshape(-1)
    if rep > 1:
        v = jnp.tile(v, rep)
    return v.reshape(1, lane_w)


@functools.partial(jax.jit, static_argnames=("accumulate", "fused_max_bytes"))
def _ffno_norm_forward(x, prev_sum, prev_sq, count, std_eps, *, accumulate, fused_max_bytes):
    orig_shape = x.shape
    h = int(x.shape[-1])
    x2d = x.reshape(-1, h)                 # pool dims: 'b ... h' -> '(b ...) h'
    rows = int(x2d.shape[0])

    rep, lane_w = _pack_info(rows, h)
    xp = x2d.reshape(-1, lane_w) if rep > 1 else x2d
    packed_rows = int(xp.shape[0])

    vmem_limit = _vmem_budget_bytes()
    new_sum, new_sq, new_count = prev_sum, prev_sq, count

    use_fused = accumulate and (packed_rows * lane_w * 4 <= fused_max_bytes)

    if use_fused:
        new_count = count + jnp.float32(rows)
        inv_count = (1.0 / jnp.maximum(new_count, 1.0)).reshape(1).astype(jnp.float32)
        psum_l = _to_lane(prev_sum, rep, lane_w)
        psq_l = _to_lane(prev_sq, rep, lane_w)
        eps_l = _to_lane(std_eps, rep, lane_w)
        fold_m = None
        if rep > 1:
            ch = jnp.arange(lane_w, dtype=jnp.int32) % h
            fold_m = (ch[:, None] == ch[None, :]).astype(jnp.float32)   # (lane_w, lane_w)
        yp, xs_l, xq_l = _fused_forward(xp, inv_count, psum_l, psq_l, eps_l,
                                        fold_m, rep, vmem_limit)
        if rep > 1:
            x_sum = xs_l.reshape(rep, h).sum(axis=0)
            x_sq = xq_l.reshape(rep, h).sum(axis=0)
        else:
            x_sum = xs_l.reshape(h)
            x_sq = xq_l.reshape(h)
        new_sum = prev_sum + x_sum
        new_sq = prev_sq + x_sq
    else:
        tile, cores, inner = _plan_tiling(packed_rows, lane_w, xp.dtype.itemsize)
        if accumulate:
            s_blk, q_blk = _compute_stats(xp, tile, cores, inner, vmem_limit)
            s_lane = jnp.sum(s_blk, axis=(0, 1))          # (lane_w,)
            q_lane = jnp.sum(q_blk, axis=(0, 1))
            if rep > 1:
                x_sum = s_lane.reshape(rep, h).sum(axis=0)
                x_sq = q_lane.reshape(rep, h).sum(axis=0)
            else:
                x_sum, x_sq = s_lane, q_lane
            new_sum = prev_sum + x_sum
            new_sq = prev_sq + x_sq
            new_count = count + jnp.float32(rows)

        safe = jnp.maximum(new_count, 1.0)
        mean = new_sum / safe
        var = jnp.maximum(new_sq / safe - mean * mean, 0.0)
        std = jnp.maximum(jnp.sqrt(var), std_eps)
        scale = 1.0 / std                                 # multiply in-kernel, don't divide
        shift = -mean * scale
        yp = _normalize(xp, _to_lane(scale, rep, lane_w), _to_lane(shift, rep, lane_w),
                        tile, vmem_limit)

    y2d = yp.reshape(rows, h) if rep > 1 else yp          # un-fold lanes
    return y2d.reshape(orig_shape), new_sum, new_sq, new_count


# ----------------------------------------------------------------------------
# FFNO_Normalizer (forward pass) in JAX + Pallas.
# ----------------------------------------------------------------------------
class FFNONormalizerPallas:
    def __init__(self, size, max_accumulations=10 ** 6, std_epsilon=1e-8,
                 fused_max_bytes=_FUSED_MAX_BYTES):
        self.max_accumulations = max_accumulations
        self.fused_max_bytes = int(fused_max_bytes)
        self.count = jnp.zeros((), jnp.float32)
        self.n_accumulations = jnp.zeros((), jnp.float32)
        self.sum = jnp.zeros(size, jnp.float32)
        self.sum_squared = jnp.zeros(size, jnp.float32)
        self.one = jnp.ones((), jnp.float32)
        self.std_epsilon = jnp.full(size, std_epsilon, jnp.float32)
        # Host-side mirror of n_accumulations: the training gate never forces a
        # device->host sync per forward.  (If restoring from checkpointed device state,
        # also restore this counter so the gate stays consistent.)
        self._n_acc_host = 0
        self.training = True

    @property
    def mean(self):
        safe = jnp.maximum(self.count, self.one)
        return self.sum / safe

    @property
    def std(self):
        safe = jnp.maximum(self.count, self.one)
        m = self.sum / safe
        var = jnp.maximum(self.sum_squared / safe - m * m, 0.0)
        return jnp.maximum(jnp.sqrt(var), self.std_epsilon)

    def forward(self, x):
        accumulate = bool(self.training and self._n_acc_host < self.max_accumulations)
        y, new_sum, new_sq, new_count = _ffno_norm_forward(
            x, self.sum, self.sum_squared, self.count, self.std_epsilon,
            accumulate=accumulate, fused_max_bytes=self.fused_max_bytes)
        if accumulate:
            self.sum, self.sum_squared, self.count = new_sum, new_sq, new_count
            self._n_acc_host += 1
            self.n_accumulations = jnp.asarray(float(self._n_acc_host), jnp.float32)
        return y

    __call__ = forward


# ----------------------------------------------------------------------------
# Pure-JAX reference for validation.
# ----------------------------------------------------------------------------
def _reference_norm(x_batches, x_apply, std_eps=1e-8):
    """Normalize x_apply using stats accumulated over all arrays in x_batches."""
    h = x_apply.shape[-1]
    flat = jnp.concatenate([b.reshape(-1, h) for b in x_batches], axis=0).astype(jnp.float32)
    count = jnp.float32(flat.shape[0])
    s = flat.sum(axis=0)
    ss = (flat ** 2).sum(axis=0)
    safe = jnp.maximum(count, 1.0)
    mean = s / safe
    var = jnp.maximum(ss / safe - mean ** 2, 0.0)
    std = jnp.maximum(jnp.sqrt(var), std_eps)
    y = (x_apply.reshape(-1, h).astype(jnp.float32) - mean) / std
    return y.reshape(x_apply.shape)


if __name__ == "__main__":
    key = jax.random.PRNGKey(0)
    k1, k2, k3 = jax.random.split(key, 3)

    # Small channels-last input: exercises the lane-dense repack (H=4 -> 128-lane tiles).
    B, M, N, H = 2, 16, 16, 4
    x1 = jax.random.normal(k1, (B, M, N, H), jnp.float32) * 3.0 + 1.5
    x2 = jax.random.normal(k2, (B, M, N, H), jnp.float32) * 2.0 - 0.5

    # 1) Fused single-pass path (default for small inputs).
    norm = FFNONormalizerPallas(size=(H,))
    y1 = jax.block_until_ready(norm.forward(x1))
    assert y1.shape == x1.shape
    assert jnp.allclose(y1, _reference_norm([x1], x1), atol=1e-4, rtol=1e-4), "fused fwd1"

    y2 = jax.block_until_ready(norm.forward(x2))
    assert jnp.allclose(y2, _reference_norm([x1, x2], x2), atol=1e-4, rtol=1e-4), "fused fwd2"

    # Eval mode: normalize-only (running stats frozen).
    norm.training = False
    y3 = jax.block_until_ready(norm.forward(x1))
    assert jnp.allclose(y3, _reference_norm([x1, x2], x1), atol=1e-4, rtol=1e-4), "eval fwd"

    # 2) Two-pass (stats + normalize) path, forced via fused_max_bytes=0.
    norm_tp = FFNONormalizerPallas(size=(H,), fused_max_bytes=0)
    y1b = jax.block_until_ready(norm_tp.forward(x1))
    assert jnp.allclose(y1b, _reference_norm([x1], x1), atol=1e-4, rtol=1e-4), "two-pass fwd1"
    y2b = jax.block_until_ready(norm_tp.forward(x2))
    assert jnp.allclose(y2b, _reference_norm([x1, x2], x2), atol=1e-4, rtol=1e-4), "two-pass fwd2"

    # 3) Ragged row count with H=128 (no repack): exercises the in-kernel tail masking,
    #    the 2-TensorCore stats split, and ragged output writeback.
    H3 = 128
    x3 = jax.random.normal(k3, (3, 33, H3), jnp.float32) * 1.7 + 0.3
    norm_r = FFNONormalizerPallas(size=(H3,), fused_max_bytes=0)
    y4 = jax.block_until_ready(norm_r.forward(x3))
    assert jnp.allclose(y4, _reference_norm([x3], x3), atol=1e-4, rtol=1e-4), "ragged two-pass"

    norm_rf = FFNONormalizerPallas(size=(H3,))
    y5 = jax.block_until_ready(norm_rf.forward(x3))
    assert jnp.allclose(y5, _reference_norm([x3], x3), atol=1e-4, rtol=1e-4), "ragged fused"

    print("KERNEL_OK")
</pallas_src>

<mosaic_0001>
module attributes {stable_mosaic.version = 11 : i64} {
  func.func @kernel(%arg0: memref<1xf32, #tpu.memory_space<smem>>, %arg1: memref<1x128xf32, #tpu.memory_space<vmem>>, %arg2: memref<1x128xf32, #tpu.memory_space<vmem>>, %arg3: memref<1x128xf32, #tpu.memory_space<vmem>>, %arg4: memref<128x128xf32, #tpu.memory_space<vmem>>, %arg5: memref<16x128xf32, #tpu.memory_space<vmem>>, %arg6: memref<16x128xf32, #tpu.memory_space<vmem>>, %arg7: memref<1x128xf32, #tpu.memory_space<vmem>>, %arg8: memref<1x128xf32, #tpu.memory_space<vmem>>) attributes {dimension_semantics = [], scalar_prefetch = 0 : i64, scratch_operands = 0 : i64, tpu.core_type = #tpu.core_type<tc>} {
    %c0 = arith.constant 0 : index
    %c0_0 = arith.constant 0 : index
    %0 = vector.load %arg5[%c0, %c0_0] : memref<16x128xf32, #tpu.memory_space<vmem>>, vector<16x128xf32>
    %cst = arith.constant dense<0.000000e+00> : vector<128xf32>
    %1 = vector.multi_reduction <add>, %0, %cst [0] : vector<16x128xf32> to vector<128xf32>
    %2 = vector.shape_cast %1 : vector<128xf32> to vector<1x128xf32>
    %3 = arith.mulf %0, %0 : vector<16x128xf32>
    %cst_1 = arith.constant dense<0.000000e+00> : vector<128xf32>
    %4 = vector.multi_reduction <add>, %3, %cst_1 [0] : vector<16x128xf32> to vector<128xf32>
    %5 = vector.shape_cast %4 : vector<128xf32> to vector<1x128xf32>
    %c0_2 = arith.constant 0 : index
    %c0_3 = arith.constant 0 : index
    %6 = vector.load %arg7[%c0_2, %c0_3] : memref<1x128xf32, #tpu.memory_space<vmem>>, vector<1x128xf32>
    tpu.vector_store %arg7[%c0_2, %c0_3], %2 {strides = array<i32>} : memref<1x128xf32, #tpu.memory_space<vmem>>, vector<1x128xf32>,
    %c0_4 = arith.constant 0 : index
    %c0_5 = arith.constant 0 : index
    %7 = vector.load %arg8[%c0_4, %c0_5] : memref<1x128xf32, #tpu.memory_space<vmem>>, vector<1x128xf32>
    tpu.vector_store %arg8[%c0_4, %c0_5], %5 {strides = array<i32>} : memref<1x128xf32, #tpu.memory_space<vmem>>, vector<1x128xf32>,
    %c0_6 = arith.constant 0 : index
    %c0_7 = arith.constant 0 : index
    %8 = vector.load %arg4[%c0_6, %c0_7] : memref<128x128xf32, #tpu.memory_space<vmem>>, vector<128x128xf32>
    %cst_8 = arith.constant dense<0.000000e+00> : vector<1x128xf32>
    %9 = tpu.matmul %2, %8, %cst_8 {dimension_numbers = #tpu.dot_dimension_numbers<[1], [0], [0], [1], [0, 0, 1, 1], [], []>} : vector<1x128xf32>, vector<128x128xf32>, vector<1x128xf32> -> vector<1x128xf32>
    %c0_9 = arith.constant 0 : index
    %c0_10 = arith.constant 0 : index
    %10 = vector.load %arg4[%c0_9, %c0_10] : memref<128x128xf32, #tpu.memory_space<vmem>>, vector<128x128xf32>
    %cst_11 = arith.constant dense<0.000000e+00> : vector<1x128xf32>
    %11 = tpu.matmul %5, %10, %cst_11 {dimension_numbers = #tpu.dot_dimension_numbers<[1], [0], [0], [1], [0, 0, 1, 1], [], []>} : vector<1x128xf32>, vector<128x128xf32>, vector<1x128xf32> -> vector<1x128xf32>
    %c0_12 = arith.constant 0 : index
    %12 = memref.load %arg0[%c0_12] : memref<1xf32, #tpu.memory_space<smem>>
    %c0_13 = arith.constant 0 : index
    %c0_14 = arith.constant 0 : index
    %13 = vector.load %arg1[%c0_13, %c0_14] : memref<1x128xf32, #tpu.memory_space<vmem>>, vector<1x128xf32>
    %14 = arith.addf %13, %9 : vector<1x128xf32>
    %15 = vector.broadcast %12 : f32 to vector<1x128xf32>
    %16 = arith.mulf %14, %15 : vector<1x128xf32>
    %c0_15 = arith.constant 0 : index
    %c0_16 = arith.constant 0 : index
    %17 = vector.load %arg2[%c0_15, %c0_16] : memref<1x128xf32, #tpu.memory_space<vmem>>, vector<1x128xf32>
    %18 = arith.addf %17, %11 : vector<1x128xf32>
    %19 = vector.broadcast %12 : f32 to vector<1x128xf32>
    %20 = arith.mulf %18, %19 : vector<1x128xf32>
    %21 = arith.mulf %16, %16 : vector<1x128xf32>
    %22 = arith.subf %20, %21 : vector<1x128xf32>
    %cst_17 = arith.constant 0.000000e+00 : f32
    %23 = vector.broadcast %cst_17 : f32 to vector<1x128xf32>
    %24 = arith.maximumf %22, %23 : vector<1x128xf32>
    %25 = math.sqrt %24 : vector<1x128xf32>
    %c0_18 = arith.constant 0 : index
    %c0_19 = arith.constant 0 : index
    %26 = vector.load %arg3[%c0_18, %c0_19] : memref<1x128xf32, #tpu.memory_space<vmem>>, vector<1x128xf32>
    %27 = arith.maximumf %25, %26 : vector<1x128xf32>
    %cst_20 = arith.constant 1.000000e+00 : f32
    %28 = vector.broadcast %cst_20 : f32 to vector<1x128xf32>
    %29 = arith.divf %28, %27 : vector<1x128xf32>
    %cst_21 = arith.constant 0.000000e+00 : f32
    %30 = vector.broadcast %cst_21 : f32 to vector<1x128xf32>
    %31 = arith.subf %30, %16 : vector<1x128xf32>
    %32 = arith.mulf %31, %29 : vector<1x128xf32>
    %33 = vector.broadcast %29 : vector<1x128xf32> to vector<16x128xf32>
    %34 = arith.mulf %0, %33 : vector<16x128xf32>
    %35 = vector.broadcast %32 : vector<1x128xf32> to vector<16x128xf32>
    %36 = arith.addf %34, %35 : vector<16x128xf32>
    %c0_22 = arith.constant 0 : index
    %c0_23 = arith.constant 0 : index
    %37 = vector.load %arg6[%c0_22, %c0_23] : memref<16x128xf32, #tpu.memory_space<vmem>>, vector<16x128xf32>
    tpu.vector_store %arg6[%c0_22, %c0_23], %36 {strides = array<i32>} : memref<16x128xf32, #tpu.memory_space<vmem>>, vector<16x128xf32>,
    return
  }
}

</mosaic_0001>

<bundles_post_ra>
// kernel: tile.18
= control target key start
LH: loop header
LB: loop body
LE: loop exit
PB: predicated region body
PF: predicated region fallthrough
CT: control target
= control target key end

     0   :  { %s40_s0 = inlined_call_operand.vmem [shape: f32[4], index: 0, kind: input, shape index: {}]   ;;  %s41_s1 = inlined_call_operand.vmem [shape: f32[32,4], index: 1, kind: output, shape index: {}]  }
   0x1   :  { %v4_v0 = vld [vmem:[%s40_s0] ss:$0 sm:$0xff] }
   0x2   :  { %5 = vst [vmem:[%s41_s1] sm:$0xff] %v4_v0  ;;  %12 = vst [vmem:[%s41_s1 + $0x8] sm:$0xff] %v4_v0 }
   0x3   :  { %13 = vst [vmem:[%s41_s1 + $0x10] sm:$0xff] %v4_v0  ;;  %14 = vst [vmem:[%s41_s1 + $0x18] sm:$0xff] %v4_v0 }

// kernel: tile.19
= control target key start
LH: loop header
LB: loop body
LE: loop exit
PB: predicated region body
PF: predicated region fallthrough
CT: control target
= control target key end

     0   :  { %s259_s10 = smov 124   ;;  %s260_s11 = smov 116   ;;  %vm3_vm0 = vcmask 31744   ;;  %vm9_vm1 = vcmask 1048544   ;;  %vm15_vm2 = vcmask 1015744   ;;  %vm21_vm3 = vcmask 982944   ;;  %s399_s0 = inlined_call_operand.vmem [shape: f32[32,4], index: 0, kind: input, shape index: {}]   ;;  %s400_s1 = inlined_call_operand.vmem [shape: f32[1,128], index: 1, kind: output, shape index: {}]  }
   0x1   :  { %v197_v0 = vld [vmem:[%s399_s0 + $0x1f] sm:$0x1]   ;;  %v199_v1 = vld [vmem:[%s399_s0 + $0x1d] sm:$0x1]   ;;  %v198_v2 = vld [vmem:[%s399_s0 + $0x1e] sm:$0x1]  }
   0x2   :  { %7 = vrot.lane.b32.xlu0 %v197_v0, %s259_s10  ;;  %19 = vrot.lane.b32.xlu1 %v199_v1, %s260_s11  ;;  %v200_v3 = vld [vmem:[%s399_s0 + $0x1c] sm:$0x1]   ;;  %s261_s16 = smov 120   ;;  %s262_s17 = smov 112   ;;  %v201_v4 = vld [vmem:[%s399_s0 + $0x1b] sm:$0x1]  }
   0x3   :  { %v202_v5 = vld [vmem:[%s399_s0 + $0x1a] sm:$0x1]   ;;  %s263_s22 = smov 108   ;;  %s264_s23 = smov 104   ;;  %v203_v6 = vld [vmem:[%s399_s0 + $0x19] sm:$0x1]  }
   0x4   :  { %v204_v7 = vld [vmem:[%s399_s0 + $0x18] sm:$0x1]   ;;  %s265_s28 = smov 100   ;;  %s266_s29 = smov 96   ;;  %v205_v8 = vld [vmem:[%s399_s0 + $0x17] sm:$0x1]  }
   0x5   :  { %v206_v9 = vld [vmem:[%s399_s0 + $0x16] sm:$0x1]   ;;  %v2_v10 = vld [vmem:[%s399_s0] sm:$0x1]   ;;  %s267_s7 = smov 92   ;;  %s268_s8 = smov 88  }
   0x6   :  { %13 = vrot.lane.b32.xlu0 %v198_v2, %s261_s16  ;;  %25 = vrot.lane.b32.xlu1 %v200_v3, %s262_s17  ;;  %4 = vst.msk [vmem:[#allocation0] sm:$0x1] %vm3_vm0, %v2_v10   ;;  %v207_v11 = vld [vmem:[%s399_s0 + $0x15] sm:$0x1]   ;;  %v208_v12 = vld [vmem:[%s399_s0 + $0x14] sm:$0x1]  }
   0x7   :  { %s269_s13 = smov 84   ;;  %s270_s14 = smov 80   ;;  %v209_v13 = vld [vmem:[%s399_s0 + $0x13] sm:$0x1]   ;;  %v210_v14 = vld [vmem:[%s399_s0 + $0x12] sm:$0x1]  }
   0x8   :  { %s271_s19 = smov 76   ;;  %s272_s20 = smov 72   ;;  %v211_v15 = vld [vmem:[%s399_s0 + $0x11] sm:$0x1]   ;;  %v212_v16 = vld [vmem:[%s399_s0 + $0x10] sm:$0x1]  }
   0x9   :  { %s273_s25 = smov 68   ;;  %s274_s26 = smov 64   ;;  %v213_v17 = vld [vmem:[%s399_s0 + $0xf] sm:$0x1]   ;;  %v214_v18 = vld [vmem:[%s399_s0 + $0xe] sm:$0x1]  }
   0xa   :  { %31 = vrot.lane.b32.xlu0 %v201_v4, %s263_s22  ;;  %37 = vrot.lane.b32.xlu1 %v202_v5, %s264_s23  ;;  %s275_s2 = smov 60   ;;  %s276_s3 = smov 56   ;;  %v215_v19 = vld [vmem:[%s399_s0 + $0xd] sm:$0x1]   ;;  %v216_v20 = vld [vmem:[%s399_s0 + $0xc] sm:$0x1]  }
   0xb   :  { %s278_s9 = smov 48   ;;  %v217_v21 = vld [vmem:[%s399_s0 + $0xb] sm:$0x1]   ;;  %v218_v22 = vld [vmem:[%s399_s0 + $0xa] sm:$0x1]   ;;  %s280_s15 = smov 40  }
   0xc   :  { %v219_v23 = vld [vmem:[%s399_s0 + $0x9] sm:$0x1]   ;;  %v220_v24 = vld [vmem:[%s399_s0 + $0x8] sm:$0x1]   ;;  %s282_s21 = smov 32   ;;  %s284_s27 = smov 24  }
   0xd   :  { %v221_v25 = vld [vmem:[%s399_s0 + $0x7] sm:$0x1]   ;;  %v222_v26 = vld [vmem:[%s399_s0 + $0x6] sm:$0x1]   ;;  %v223_v27 = vld [vmem:[%s399_s0 + $0x5] sm:$0x1]  }
   0xe   :  { %43 = vrot.lane.b32.xlu0 %v203_v6, %s265_s28  ;;  %49 = vrot.lane.b32.xlu1 %v204_v7, %s266_s29  ;;  %v224_v28 = vld [vmem:[%s399_s0 + $0x4] sm:$0x1]   ;;  %s286_s4 = smov 16   ;;  %v225_v29 = vld [vmem:[%s399_s0 + $0x3] sm:$0x1]   ;;  %s288_s10 = smov 8  }
   0xf   :  { %v226_v30 = vld [vmem:[%s399_s0 + $0x2] sm:$0x1]   ;;  %v227_v31 = vld [vmem:[%s399_s0 + $0x1] sm:$0x1]   ;;  %s289_s0 = smov 4   ;;  %vm27_vm4 = vcmask 950144  }
  0x10   :  { %vm33_vm5 = vcmask 917344   ;;  %vm39_vm6 = vcmask 884544   ;;  %vm45_vm7 = vcmask 851744   ;;  %vm51_vm8 = vcmask 818944  }
  0x11   :  { %vm57_vm9 = vcmask 786144   ;;  %vm63_vm10 = vcmask 753344   ;;  %vm69_vm11 = vcmask 720544   ;;  %vm75_vm12 = vcmask 687744  }
  0x12   :  { %55 = vrot.lane.b32.xlu0 %v205_v8, %s267_s7  ;;  %61 = vrot.lane.b32.xlu1 %v206_v9, %s268_s8  ;;  %s277_s8 = smov 52   ;;  %vm81_vm13 = vcmask 654944   ;;  %vm87_vm14 = vcmask 622144   ;;  %vm93_vm15 = vcmask 589344   ;;  %vm99_vm0 = vcmask 556544  }
  0x16   :  { %67 = vrot.lane.b32.xlu0 %v207_v11, %s269_s13  ;;  %73 = vrot.lane.b32.xlu1 %v208_v12, %s270_s14  ;;  %s279_s14 = smov 44  }
  0x1a   :  { %79 = vrot.lane.b32.xlu0 %v209_v13, %s271_s19  ;;  %85 = vrot.lane.b32.xlu1 %v210_v14, %s272_s20  ;;  %s281_s20 = smov 36  }
  0x1e   :  { %91 = vrot.lane.b32.xlu0 %v211_v15, %s273_s25  ;;  %97 = vrot.lane.b32.xlu1 %v212_v16, %s274_s26  ;;  %s283_s26 = smov 28  }
  0x22   :  { %103 = vrot.lane.b32.xlu0 %v213_v17, %s275_s2  ;;  %109 = vrot.lane.b32.xlu1 %v214_v18, %s276_s3  ;;  %s285_s3 = smov 20  }
  0x26   :  { %115 = vrot.lane.b32.xlu0 %v215_v19, %s277_s8  ;;  %121 = vrot.lane.b32.xlu1 %v216_v20, %s278_s9  ;;  %s287_s9 = smov 12  }
  0x2a   :  { %127 = vrot.lane.b32.xlu0 %v217_v21, %s279_s14  ;;  %133 = vrot.lane.b32.xlu1 %v218_v22, %s280_s15 }
  0x2e   :  { %139 = vrot.lane.b32.xlu0 %v219_v23, %s281_s20  ;;  %145 = vrot.lane.b32.xlu1 %v220_v24, %s282_s21 }
  0x32   :  { %151 = vrot.lane.b32.xlu0 %v221_v25, %s283_s26  ;;  %157 = vrot.lane.b32.xlu1 %v222_v26, %s284_s27 }
  0x36   :  { %163 = vrot.lane.b32.xlu0 %v223_v27, %s285_s3  ;;  %169 = vrot.lane.b32.xlu1 %v224_v28, %s286_s4 }
  0x3a   :  { %175 = vrot.lane.b32.xlu0 %v225_v29, %s287_s9  ;;  %181 = vrot.lane.b32.xlu1 %v226_v30, %s288_s10 }
  0x3e   :  { %187 = vrot.lane.b32.xlu0 %v227_v31, %s289_s0 }
  0x74   :  { %v8_v32 = vpop.permute.xlu0 %7   ;;  %v20_v33 = vpop.permute.xlu1 %19  }
  0x75   :  { %10 = vst.msk [vmem:[#allocation0] sm:$0x1] %vm9_vm1, %v8_v32   ;;  %vm105_vm1 = vcmask 523744  }
  0x78   :  { %v14_v34 = vpop.permute.xlu0 %13   ;;  %v26_v35 = vpop.permute.xlu1 %25  }
  0x79   :  { %16 = vst.msk [vmem:[#allocation0] sm:$0x1] %vm15_vm2, %v14_v34   ;;  %vm111_vm2 = vcmask 490944  }
  0x7a   :  { %22 = vst.msk [vmem:[#allocation0] sm:$0x1] %vm21_vm3, %v20_v33   ;;  %vm117_vm3 = vcmask 458144  }
  0x7b   :  { %28 = vst.msk [vmem:[#allocation0] sm:$0x1] %vm27_vm4, %v26_v35   ;;  %vm123_vm4 = vcmask 425344  }
  0x7c   :  { %v32_v36 = vpop.permute.xlu0 %31   ;;  %v38_v37 = vpop.permute.xlu1 %37  }
  0x7d   :  { %34 = vst.msk [vmem:[#allocation0] sm:$0x1] %vm33_vm5, %v32_v36   ;;  %vm129_vm5 = vcmask 392544  }
  0x7e   :  { %40 = vst.msk [vmem:[#allocation0] sm:$0x1] %vm39_vm6, %v38_v37   ;;  %vm135_vm6 = vcmask 359744  }
  0x80   :  { %v44_v38 = vpop.permute.xlu0 %43   ;;  %v50_v39 = vpop.permute.xlu1 %49  }
  0x81   :  { %46 = vst.msk [vmem:[#allocation0] sm:$0x1] %vm45_vm7, %v44_v38   ;;  %vm141_vm7 = vcmask 326944  }
  0x82   :  { %52 = vst.msk [vmem:[#allocation0] sm:$0x1] %vm51_vm8, %v50_v39   ;;  %vm147_vm8 = vcmask 294144  }
  0x84   :  { %v56_v40 = vpop.permute.xlu0 %55   ;;  %v62_v41 = vpop.permute.xlu1 %61  }
  0x85   :  { %58 = vst.msk [vmem:[#allocation0] sm:$0x1] %vm57_vm9, %v56_v40   ;;  %vm153_vm9 = vcmask 261344  }
  0x86   :  { %64 = vst.msk [vmem:[#allocation0] sm:$0x1] %vm63_vm10, %v62_v41   ;;  %vm159_vm10 = vcmask 228544  }
  0x88   :  { %v68_v42 = vpop.permute.xlu0 %67   ;;  %v74_v43 = vpop.permute.xlu1 %73  }
  0x89   :  { %70 = vst.msk [vmem:[#allocation0] sm:$0x1] %vm69_vm11, %v68_v42   ;;  %vm165_vm11 = vcmask 195744  }
  0x8a   :  { %76 = vst.msk [vmem:[#allocation0] sm:$0x1] %vm75_vm12, %v74_v43   ;;  %vm171_vm12 = vcmask 162944  }
  0x8c   :  { %v80_v44 = vpop.permute.xlu0 %79   ;;  %v86_v45 = vpop.permute.xlu1 %85  }
  0x8d   :  { %82 = vst.msk [vmem:[#allocation0] sm:$0x1] %vm81_vm13, %v80_v44   ;;  %vm177_vm13 = vcmask 130144  }
  0x8e   :  { %88 = vst.msk [vmem:[#allocation0] sm:$0x1] %vm87_vm14, %v86_v45   ;;  %vm183_vm14 = vcmask 97344  }
  0x90   :  { %v92_v46 = vpop.permute.xlu0 %91   ;;  %v98_v47 = vpop.permute.xlu1 %97  }
  0x91   :  { %94 = vst.msk [vmem:[#allocation0] sm:$0x1] %vm93_vm15, %v92_v46   ;;  %vm189_vm15 = vcmask 64544  }
  0x92   :  { %100 = vst.msk [vmem:[#allocation0] sm:$0x1] %vm99_vm0, %v98_v47  }
  0x94   :  { %v104_v48 = vpop.permute.xlu0 %103   ;;  %v110_v49 = vpop.permute.xlu1 %109  }
  0x95   :  { %106 = vst.msk [vmem:[#allocation0] sm:$0x1] %vm105_vm1, %v104_v48  }
  0x96   :  { %112 = vst.msk [vmem:[#allocation0] sm:$0x1] %vm111_vm2, %v110_v49  }
  0x98   :  { %v116_v50 = vpop.permute.xlu0 %115   ;;  %v122_v51 = vpop.permute.xlu1 %121  }
  0x99   :  { %118 = vst.msk [vmem:[#allocation0] sm:$0x1] %vm117_vm3, %v116_v50  }
  0x9a   :  { %124 = vst.msk [vmem:[#allocation0] sm:$0x1] %vm123_vm4, %v122_v51  }
  0x9c   :  { %v128_v52 = vpop.permute.xlu0 %127   ;;  %v134_v53 = vpop.permute.xlu1 %133  }
  0x9d   :  { %130 = vst.msk [vmem:[#allocation0] sm:$0x1] %vm129_vm5, %v128_v52  }
  0x9e   :  { %136 = vst.msk [vmem:[#allocation0] sm:$0x1] %vm135_vm6, %v134_v53  }
  0xa0   :  { %v140_v54 = vpop.permute.xlu0 %139   ;;  %v146_v55 = vpop.permute.xlu1 %145  }
  0xa1   :  { %142 = vst.msk [vmem:[#allocation0] sm:$0x1] %vm141_vm7, %v140_v54  }
  0xa2   :  { %148 = vst.msk [vmem:[#allocation0] sm:$0x1] %vm147_vm8, %v146_v55  }
  0xa4   :  { %v152_v56 = vpop.permute.xlu0 %151   ;;  %v158_v57 = vpop.permute.xlu1 %157  }
  0xa5   :  { %154 = vst.msk [vmem:[#allocation0] sm:$0x1] %vm153_vm9, %v152_v56  }
  0xa6   :  { %160 = vst.msk [vmem:[#allocation0] sm:$0x1] %vm159_vm10, %v158_v57  }
  0xa8   :  { %v164_v58 = vpop.permute.xlu0 %163   ;;  %v170_v59 = vpop.permute.xlu1 %169  }
  0xa9   :  { %166 = vst.msk [vmem:[#allocation0] sm:$0x1] %vm165_vm11, %v164_v58  }
  0xaa   :  { %172 = vst.msk [vmem:[#allocation0] sm:$0x1] %vm171_vm12, %v170_v59  }
  0xac   :  { %v176_v60 = vpop.permute.xlu0 %175   ;;  %v182_v61 = vpop.permute.xlu1 %181  }
  0xad   :  { %178 = vst.msk [vmem:[#allocation0] sm:$0x1] %vm177_vm13, %v176_v60  }
  0xae   :  { %184 = vst.msk [vmem:[#allocation0] sm:$0x1] %vm183_vm14, %v182_v61  }
  0xb0   :  { %v188_v62 = vpop.permute.xlu0 %187  }
  0xb1   :  { %190 = vst.msk [vmem:[#allocation0] sm:$0x1] %vm189_vm15, %v188_v62  }
  0xb8   :  { %v194_v63 = vld [vmem:[#allocation0] sm:$0x1] }
  0xb9   :  { %196 = vst [vmem:[%s400_s1] sm:$0x1] %v194_v63 }

// kernel: _ffno_norm_forward.1
= control target key start
LH: loop header
LB: loop body
LE: loop exit
PB: predicated region body
PF: predicated region fallthrough
CT: control target
= control target key end

     0   :  { %v416_v0 = vmov 0.0|0.0   ;;  %vm417_vm0 = vmmov 0   ;;  %v418_v6 = vmov 0.0   ;;  %s570_s4 = inlined_call_operand.vmem [shape: f32[128,128], index: 4, kind: input, shape index: {}]   ;;  %s571_s5 = inlined_call_operand.vmem [shape: f32[16,128], index: 5, kind: input, shape index: {}]   ;;  %s572_s7 = inlined_call_operand.vmem [shape: f32[1,128], index: 7, kind: output, shape index: {1}]   ;;  %s573_s8 = inlined_call_operand.vmem [shape: f32[1,128], index: 8, kind: output, shape index: {2}]   ;;  %s574_s1 = inlined_call_operand.vmem [shape: f32[1,128], index: 1, kind: input, shape index: {}]   ;;  %s575_s2 = inlined_call_operand.vmem [shape: f32[1,128], index: 2, kind: input, shape index: {}]   ;;  %s576_s0 = inlined_call_operand.<no memory space> [shape: f32[1], index: 0, kind: input, shape index: {}]   ;;  %s577_s3 = inlined_call_operand.vmem [shape: f32[1,128], index: 3, kind: input, shape index: {}]   ;;  %s578_s6 = inlined_call_operand.vmem [shape: f32[16,128], index: 6, kind: output, shape index: {0}]  }
   0x1   :  { %361 = vmatprep.subr.bf16.mxu0 %v416_v0  ;;  %v47_v1 = vld [vmem:[%s570_s4] sm:$0xff]  ;;  %v48_v2 = vld [vmem:[%s570_s4 + $0x8] sm:$0xff]  ;;  %385 = vmatprep.subr.bf16.mxu1 %v416_v0  ;;  %v49_v3 = vld [vmem:[%s570_s4 + $0x10] sm:$0xff]  ;;  %v206_v47 = vstv %s576_s0 }
   0x2   :  { %v362_v4 = vpack.c.bf16 %v48_v2, %v47_v1  ;;  %v50_v5 = vld [vmem:[%s570_s4 + $0x18] sm:$0xff]  ;;  %323 = vmatprep.mubr.msk.f32.mxu0 %vm417_vm0, %v418_v6  ;;  %358 = vmatprep.mubr.msk.f32.mxu1 %vm417_vm0, %v418_v6  ;;  %v51_v8 = vld [vmem:[%s570_s4 + $0x20] sm:$0xff]  ;;  %v52_v9 = vld [vmem:[%s570_s4 + $0x28] sm:$0xff]  ;;  %v228_v1 = vlaneseq }
   0x3   :  { %v365_v7 = vpack.c.bf16 %v50_v5, %v49_v3  ;;  %v489_v10 = vld [vmem:[%s571_s5] sm:$0xff]  ;;  %v494_v11 = vld [vmem:[%s571_s5 + $0x8] sm:$0xff]  ;;  %v368_v15 = vpack.c.bf16 %v52_v9, %v51_v8  ;;  %v53_v16 = vld [vmem:[%s570_s4 + $0x30] sm:$0xff] }
   0x4   :  { %363 = vmatpush3.bf16.msra.mxu0 %v362_v4  ;;  %387 = vmatpush3.bf16.msra.mxu1 %v362_v4  ;;  %v29_v12 = vadd.f32 %v494_v11, %v489_v10  ;;  %v36_v13 = vmul.f32 %v489_v10, %v489_v10  ;;  %v37_v14 = vmul.f32 %v494_v11, %v494_v11  ;;  %v54_v17 = vld [vmem:[%s570_s4 + $0x38] sm:$0xff]  ;;  %v55_v23 = vld [vmem:[%s570_s4 + $0x40] sm:$0xff]  ;;  %v56_v24 = vld [vmem:[%s570_s4 + $0x48] sm:$0xff]  ;;  %v229_v2 = vshrl.u32 %v228_v1, 7 }
   0x5   :  { %364 = vmatprep.subr.bf16.mxu0 %v416_v0  ;;  %388 = vmatprep.subr.bf16.mxu1 %v416_v0  ;;  %v371_v22 = vpack.c.bf16 %v54_v17, %v53_v16  ;;  %v374_v29 = vpack.c.bf16 %v56_v24, %v55_v23  ;;  %v57_v30 = vld [vmem:[%s570_s4 + $0x50] sm:$0xff]  ;;  %v58_v31 = vld [vmem:[%s570_s4 + $0x58] sm:$0xff]  ;;  %v59_v37 = vld [vmem:[%s570_s4 + $0x60] sm:$0xff] }
   0x6   :  { %v30_v18 = vrot.slane %v29_v12, 4  ;;  %v38_v19 = vadd.f32 %v37_v14, %v36_v13  ;;  %v377_v36 = vpack.c.bf16 %v58_v31, %v57_v30  ;;  %v60_v38 = vld [vmem:[%s570_s4 + $0x68] sm:$0xff]  ;;  %v61_v41 = vld [vmem:[%s570_s4 + $0x70] sm:$0xff]  ;;  %v62_v42 = vld [vmem:[%s570_s4 + $0x78] sm:$0xff]  ;;  %v230_v3 = vsub.s32 0, %v229_v2 }
   0x7   :  { %v380_v40 = vpack.c.bf16 %v60_v38, %v59_v37  ;;  %v383_v43 = vpack.c.bf16 %v62_v42, %v61_v41  ;;  %v204_v44 = vld [vmem:[%s574_s1] sm:$0x1] }
   0x8   :  { %366 = vmatpush3.bf16.msra.mxu0 %v365_v7  ;;  %390 = vmatpush3.bf16.msra.mxu1 %v365_v7  ;;  %v31_v20 = vadd.f32 %v30_v18, %v29_v12  ;;  %v39_v21 = vrot.slane %v38_v19, 4  ;;  %v208_v45 = vld [vmem:[%s575_s2] sm:$0x1] }
   0x9   :  { %367 = vmatprep.subr.bf16.mxu0 %v416_v0  ;;  %391 = vmatprep.subr.bf16.mxu1 %v416_v0  ;;  %v221_v61 = vld [vmem:[%s577_s3] sm:$0x1] }
   0xa   :  { %v32_v25 = vrot.slane %v31_v20, 2  ;;  %v40_v26 = vadd.f32 %v39_v21, %v38_v19 }
   0xc   :  { %369 = vmatpush3.bf16.msra.mxu0 %v368_v15  ;;  %393 = vmatpush3.bf16.msra.mxu1 %v368_v15  ;;  %v33_v27 = vadd.f32 %v32_v25, %v31_v20  ;;  %v41_v28 = vrot.slane %v40_v26, 2 }
   0xd   :  { %370 = vmatprep.subr.bf16.mxu0 %v416_v0  ;;  %394 = vmatprep.subr.bf16.mxu1 %v416_v0 }
   0xe   :  { %v34_v32 = vrot.slane %v33_v27, 1  ;;  %v42_v33 = vadd.f32 %v41_v28, %v40_v26 }
  0x10   :  { %372 = vmatpush3.bf16.msra.mxu0 %v371_v22  ;;  %396 = vmatpush3.bf16.msra.mxu1 %v371_v22  ;;  %v35_v34 = vadd.f32 %v34_v32, %v33_v27  ;;  %v43_v35 = vrot.slane %v42_v33, 1 }
  0x11   :  { %373 = vmatprep.subr.bf16.mxu0 %v416_v0  ;;  %397 = vmatprep.subr.bf16.mxu1 %v416_v0 }
  0x12   :  { %45 = vst [vmem:[%s572_s7] sm:$0x1] %v35_v34  ;;  %v44_v39 = vadd.f32 %v43_v35, %v42_v33 }
  0x14   :  { %375 = vmatpush3.bf16.msra.mxu0 %v374_v29  ;;  %399 = vmatpush3.bf16.msra.mxu1 %v374_v29  ;;  %46 = vst [vmem:[%s573_s8] sm:$0x1] %v44_v39 }
  0x15   :  { %376 = vmatprep.subr.bf16.mxu0 %v416_v0  ;;  %400 = vmatprep.subr.bf16.mxu1 %v416_v0 }
  0x18   :  { %378 = vmatpush3.bf16.msra.mxu0 %v377_v36  ;;  %402 = vmatpush3.bf16.msra.mxu1 %v377_v36 }
  0x19   :  { %379 = vmatprep.subr.bf16.mxu0 %v416_v0  ;;  %403 = vmatprep.subr.bf16.mxu1 %v416_v0 }
  0x1c   :  { %381 = vmatpush3.bf16.msra.mxu0 %v380_v40  ;;  %405 = vmatpush3.bf16.msra.mxu1 %v380_v40 }
  0x1d   :  { %382 = vmatprep.subr.bf16.mxu0 %v416_v0  ;;  %406 = vmatprep.subr.bf16.mxu1 %v416_v0 }
  0x20   :  { %384 = vmatpush3.bf16.msra.mxu0 %v383_v43  ;;  %408 = vmatpush3.bf16.msra.mxu1 %v383_v43 }
  0x23   :  { %324 = vmatmul.mubr.f32.vlgmr.msra.gmra.mrb[0].mxu0 %v35_v34  ;;  %359 = vmatmul.mubr.f32.vlgmr.msra.gmra.mrb[0].mxu1 %v44_v39 }
  0xf6   :  { %v129_v46 = vpop.f32.mrb[0].mxu0  ;;  %v199_v48 = vpop.f32.mrb[0].mxu1 }
  0xf7   :  { %v205_v49 = vadd.f32 %v204_v44, %v129_v46  ;;  %v325_v50 = vpop.f32.mrb[1].mxu0  ;;  %v209_v51 = vadd.f32 %v208_v45, %v199_v48  ;;  %v360_v52 = vpop.f32.mrb[1].mxu1 }
  0xf9   :  { %v207_v53 = vmul.f32 %v206_v47, %v205_v49  ;;  %v210_v54 = vmul.f32 %v209_v51, %v206_v47 }
  0xfb   :  { %v211_v55 = vmul.f32 %v207_v53, %v207_v53  ;;  %v225_v4 = vsub.f32 0.0, %v207_v53 }
  0xfd   :  { %v212_v56 = vsub.f32 %v210_v54, %v211_v55 }
  0xff   :  { %v213_v57 = vmax.f32 %v212_v56, 0.0 }
 0x101   :  { %412 = vrsqrt.f32 %v213_v57  ;;  %vm216_vm1 = vcmp.eq.f32.partialorder %v213_v57, inf  ;;  %v219_v60 = vand.u32 2147483648, %v213_v57  ;;  %vm218_vm2 = vcmp.eq.f32.partialorder %v213_v57, 0.0 }
 0x10b   :  { %v413_v58 = vpop.eup %412 }
 0x10c   :  { %v215_v59 = vmul.f32 %v413_v58, %v213_v57 }
 0x10e   :  { %v217_v62 = vsel %vm216_vm1, %v213_v57, %v215_v59 }
 0x10f   :  { %v220_v63 = vsel %vm218_vm2, %v219_v60, %v217_v62 }
 0x110   :  { %v222_v0 = vmax.f32 %v220_v63, %v221_v61 }
 0x112   :  { %414 = vrcp.f32 %v222_v0 }
 0x11c   :  { %v415_v5 = vpop.eup %414 }
 0x11d   :  { %v226_v6 = vmul.f32 %v415_v5, %v225_v4  ;;  %v231_v7 = vrot.slane %v415_v5, %v230_v3 }
 0x11f   :  { %v233_v8 = vmul.f32 %v231_v7, %v489_v10  ;;  %v234_v9 = vmul.f32 %v231_v7, %v494_v11  ;;  %v239_v12 = vrot.slane %v226_v6, %v230_v3 }
 0x121   :  { %v241_v13 = vadd.f32 %v239_v12, %v233_v8  ;;  %v242_v14 = vadd.f32 %v239_v12, %v234_v9 }
 0x123   :  { %243 = vst [vmem:[%s578_s6] sm:$0xff] %v241_v13  ;;  %244 = vst [vmem:[%s578_s6 + $0x8] sm:$0xff] %v242_v14 }

</bundles_post_ra>
